<compile_context>
chip_gen: v7x
topology: tpu7x:2x2x1
jax: 0.10.0
libtpu: 0.0.40
codegen_flags: <defaults>
</compile_context>

<pallas_src>
import functools

import jax
import jax.numpy as jnp
from jax.experimental import pallas as pl
from jax.experimental.pallas import tpu as pltpu


# ---------------------------------------------------------------------------
# Kernels (inputs are lane-dense: [C, TB] = classes x batch-tile)
# ---------------------------------------------------------------------------
def _mr_kernel(st_ref, loss_ref, acc_ref, *, margin, total_b, tile_b, num_classes):
    """Margin ranking loss, mean reduction, accumulated over batch tiles.

    st_ref   : VMEM [C, TB]   transposed score tile (class 0 = positive)
    loss_ref : SMEM [1, 1]    scalar output (written at the last tile)
    acc_ref  : SMEM [1]       running f32 sum across tiles
    """
    i = pl.program_id(0)

    @pl.when(i == 0)
    def _():
        acc_ref[0] = jnp.float32(0.0)

    s = st_ref[...].astype(jnp.float32)                       # [C, TB]
    s0 = s[0:1, :]                                            # positive score row
    # y = +1  =>  loss = max(0, s_neg - s_pos + margin); full-tile form + mask
    h = jnp.maximum(s - s0 + jnp.float32(margin), 0.0)        # [C, TB]

    row = jax.lax.broadcasted_iota(jnp.int32, s.shape, 0)
    col = jax.lax.broadcasted_iota(jnp.int32, s.shape, 1)
    valid_cols = total_b - i * tile_b                         # batch cols valid here
    mask = (row > 0) & (col < valid_cols)                     # drop row 0 + padding
    acc_ref[0] += jnp.sum(jnp.where(mask, h, 0.0))

    @pl.when(i == pl.num_programs(0) - 1)
    def _():
        loss_ref[0, 0] = acc_ref[0] / jnp.float32(total_b * (num_classes - 1))


def _nll_kernel(st_ref, loss_ref, acc_ref, *, total_b, tile_b):
    """NLLLoss(mean) over log_softmax(scores, dim=1) with target class 0.

    st_ref   : VMEM [C, TB]   transposed score tile
    loss_ref : SMEM [1, 1]    scalar output (written at the last tile)
    acc_ref  : SMEM [1]       running f32 sum across tiles
    """
    i = pl.program_id(0)

    @pl.when(i == 0)
    def _():
        acc_ref[0] = jnp.float32(0.0)

    s = st_ref[...].astype(jnp.float32)                       # [C, TB]
    m = jnp.max(s, axis=0, keepdims=True)                     # [1, TB]
    lse = m + jnp.log(jnp.sum(jnp.exp(s - m), axis=0, keepdims=True))  # [1, TB]
    nll = lse - s[0:1, :]                                     # [1, TB]

    col = jax.lax.broadcasted_iota(jnp.int32, nll.shape, 1)
    valid_cols = total_b - i * tile_b
    acc_ref[0] += jnp.sum(jnp.where(col < valid_cols, nll, 0.0))

    @pl.when(i == pl.num_programs(0) - 1)
    def _():
        loss_ref[0, 0] = acc_ref[0] / jnp.float32(total_b)


# ---------------------------------------------------------------------------
# Wrapper (the "Criterion" module)
# ---------------------------------------------------------------------------
def criterion_loss(scores: jax.Array, loss_type: str = "mr",
                   margin: float = 1.0, tile_b: int | None = None):
    """Pallas equivalent of Criterion.forward(scores).  scores: [B, C]."""
    loss_type = loss_type.lower()
    if loss_type not in ("mr", "nll"):
        raise ValueError("Not defined loss function.")
    b, c = scores.shape
    if loss_type == "mr" and c < 2:
        raise ValueError("'mr' loss requires at least 2 candidate scores per row.")

    # Lane-dense layout: batch -> 128-lane axis, classes -> sublane axis.
    st = scores.T  # [C, B]

    # Batch tile (lane dim): either the full batch (<=128) or a multiple of 128.
    # 2 (double-buffer) x C x TB x 4 B stays far under every generation's
    # scoped-VMEM budget for the C values this criterion sees.
    if tile_b is None:
        tile_b = b if b <= 128 else min(512, 128 * (b // 128))
    num_tiles = pl.cdiv(b, tile_b)

    itemsize = jnp.dtype(scores.dtype).itemsize
    if loss_type == "mr":
        kernel = functools.partial(_mr_kernel, margin=float(margin),
                                   total_b=b, tile_b=tile_b, num_classes=c)
        cost = pl.CostEstimate(flops=4 * b * c, transcendentals=0,
                               bytes_accessed=b * c * itemsize + 4)
    else:
        kernel = functools.partial(_nll_kernel, total_b=b, tile_b=tile_b)
        cost = pl.CostEstimate(flops=5 * b * c, transcendentals=b * c,
                               bytes_accessed=b * c * itemsize + 4)

    out = pl.pallas_call(
        kernel,
        out_shape=jax.ShapeDtypeStruct((1, 1), jnp.float32),
        grid_spec=pltpu.PrefetchScalarGridSpec(
            num_scalar_prefetch=0,
            grid=(num_tiles,),
            in_specs=[pl.BlockSpec((c, tile_b), lambda i: (0, i))],
            out_specs=pl.BlockSpec((1, 1), lambda i: (0, 0),
                                   memory_space=pltpu.SMEM),
            scratch_shapes=[pltpu.SMEM((1,), jnp.float32)],
        ),
        compiler_params=pltpu.CompilerParams(
            dimension_semantics=("arbitrary",),   # resident scalar accumulator
            vmem_limit_bytes=32 * 1024 * 1024,    # safe on v5e/v6e/v7x
        ),
        cost_estimate=cost,
    )(st)
    return out[0, 0]


# ---------------------------------------------------------------------------
# Pure-JAX references for sanity checks
# ---------------------------------------------------------------------------
def _ref_mr(scores, margin):
    s0 = scores[:, :1].astype(jnp.float32)
    rest = scores[:, 1:].astype(jnp.float32)
    return jnp.mean(jnp.maximum(rest - s0 + margin, 0.0))


def _ref_nll(scores):
    logp = jax.nn.log_softmax(scores.astype(jnp.float32), axis=1)
    return -jnp.mean(logp[:, 0])


if __name__ == "__main__":
    key = jax.random.PRNGKey(0)
    margin = 0.5

    # Small case matching the module's typical use: batch=8, 8 candidate scores.
    B, C = 8, 8
    scores = jax.random.normal(key, (B, C), dtype=jnp.float32)

    mr = jax.block_until_ready(criterion_loss(scores, "mr", margin=margin))
    assert jnp.allclose(mr, _ref_mr(scores, margin), atol=1e-5, rtol=1e-5), (
        mr, _ref_mr(scores, margin))

    nll = jax.block_until_ready(criterion_loss(scores, "nll"))
    assert jnp.allclose(nll, _ref_nll(scores), atol=1e-5, rtol=1e-5), (
        nll, _ref_nll(scores))

    # Larger, non-divisible batch to exercise the tiled + masked-padding path
    # (tile_b = 256 -> 2 grid steps, last tile only 44 valid columns).
    B2 = 300
    scores2 = jax.random.normal(jax.random.PRNGKey(0), (B2, C), dtype=jnp.float32)

    mr2 = jax.block_until_ready(criterion_loss(scores2, "mr", margin=margin))
    assert jnp.allclose(mr2, _ref_mr(scores2, margin), atol=1e-5, rtol=1e-5), (
        mr2, _ref_mr(scores2, margin))

    nll2 = jax.block_until_ready(criterion_loss(scores2, "nll"))
    assert jnp.allclose(nll2, _ref_nll(scores2), atol=1e-5, rtol=1e-5), (
        nll2, _ref_nll(scores2))

    print("KERNEL_OK")
</pallas_src>

<mosaic_0001>
module attributes {stable_mosaic.version = 11 : i64} {
  func.func @_mr_kernel(%arg0: i32, %arg1: memref<8x8xf32, #tpu.memory_space<vmem>>, %arg2: memref<1x1xf32, #tpu.memory_space<smem>>, %arg3: memref<1xf32, #tpu.memory_space<smem>>) attributes {dimension_semantics = [#tpu.dimension_semantics<arbitrary>], iteration_bounds = array<i64: 1>, scalar_prefetch = 0 : i64, scratch_operands = 1 : i64, tpu.core_type = #tpu.core_type<tc>, window_params = [{transform_indices = @transform_0, window_bounds = array<i64: 8, 8>}, {transform_indices = @transform_1, window_bounds = array<i64: 1, 1>}]} {
    %c0_i32 = arith.constant 0 : i32
    %0 = arith.cmpi eq, %arg0, %c0_i32 : i32
    %1 = arith.extui %0 : i1 to i32
    %c0_i32_0 = arith.constant 0 : i32
    %2 = arith.cmpi ne, %1, %c0_i32_0 : i32
    scf.if %2 {
      %cst_11 = arith.constant 0.000000e+00 : f32
      %c0_12 = arith.constant 0 : index
      %32 = memref.load %arg3[%c0_12] : memref<1xf32, #tpu.memory_space<smem>>
      memref.store %cst_11, %arg3[%c0_12] : memref<1xf32, #tpu.memory_space<smem>>
    } else {
    }
    %c0 = arith.constant 0 : index
    %c0_1 = arith.constant 0 : index
    %3 = vector.load %arg1[%c0, %c0_1] : memref<8x8xf32, #tpu.memory_space<vmem>>, vector<8x8xf32>
    %4 = vector.extract_strided_slice %3 {offsets = [0, 0], sizes = [1, 8], strides = [1, 1]} : vector<8x8xf32> to vector<1x8xf32>
    %5 = vector.broadcast %4 : vector<1x8xf32> to vector<8x8xf32>
    %6 = arith.subf %3, %5 : vector<8x8xf32>
    %cst = arith.constant 5.000000e-01 : f32
    %7 = vector.broadcast %cst : f32 to vector<8x8xf32>
    %8 = arith.addf %6, %7 : vector<8x8xf32>
    %cst_2 = arith.constant 0.000000e+00 : f32
    %9 = vector.broadcast %cst_2 : f32 to vector<8x8xf32>
    %10 = arith.maximumf %8, %9 : vector<8x8xf32>
    %11 = tpu.iota {dimensions = array<i32: 0>} : vector<8x8xi32>
    %12 = tpu.iota {dimensions = array<i32: 1>} : vector<8x8xi32>
    %c8_i32 = arith.constant 8 : i32
    %13 = arith.muli %arg0, %c8_i32 : i32
    %c8_i32_3 = arith.constant 8 : i32
    %14 = arith.subi %c8_i32_3, %13 : i32
    %c0_i32_4 = arith.constant 0 : i32
    %15 = vector.broadcast %c0_i32_4 : i32 to vector<8x8xi32>
    %16 = arith.cmpi sgt, %11, %15 : vector<8x8xi32>
    %17 = vector.broadcast %14 : i32 to vector<8x8xi32>
    %18 = arith.cmpi slt, %12, %17 : vector<8x8xi32>
    %19 = arith.andi %16, %18 : vector<8x8xi1>
    %c0_5 = arith.constant 0 : index
    %20 = memref.load %arg3[%c0_5] : memref<1xf32, #tpu.memory_space<smem>>
    %cst_6 = arith.constant 0.000000e+00 : f32
    %21 = vector.broadcast %cst_6 : f32 to vector<8x8xf32>
    %22 = arith.select %19, %10, %21 : vector<8x8xi1>, vector<8x8xf32>
    %23 = vector.shape_cast %22 : vector<8x8xf32> to vector<1x8x8xf32>
    %cst_7 = arith.constant dense<0.000000e+00> : vector<1xf32>
    %24 = vector.multi_reduction <add>, %23, %cst_7 [1, 2] : vector<1x8x8xf32> to vector<1xf32>
    %25 = vector.shape_cast %24 : vector<1xf32> to vector<1x1x1xf32>
    %26 = vector.extract %25[0, 0, 0] : f32 from vector<1x1x1xf32>
    %27 = arith.addf %20, %26 : f32
    %c0_8 = arith.constant 0 : index
    %28 = memref.load %arg3[%c0_8] : memref<1xf32, #tpu.memory_space<smem>>
    memref.store %27, %arg3[%c0_8] : memref<1xf32, #tpu.memory_space<smem>>
    %c0_i32_9 = arith.constant 0 : i32
    %29 = arith.cmpi eq, %arg0, %c0_i32_9 : i32
    %30 = arith.extui %29 : i1 to i32
    %c0_i32_10 = arith.constant 0 : i32
    %31 = arith.cmpi ne, %30, %c0_i32_10 : i32
    scf.if %31 {
      %c0_11 = arith.constant 0 : index
      %32 = memref.load %arg3[%c0_11] : memref<1xf32, #tpu.memory_space<smem>>
      %cst_12 = arith.constant 5.600000e+01 : f32
      %33 = arith.divf %32, %cst_12 : f32
      %c0_13 = arith.constant 0 : index
      %c0_14 = arith.constant 0 : index
      %34 = memref.load %arg2[%c0_13, %c0_14] : memref<1x1xf32, #tpu.memory_space<smem>>
      memref.store %33, %arg2[%c0_13, %c0_14] : memref<1x1xf32, #tpu.memory_space<smem>>
    } else {
    }
    return
  }
  func.func @transform_0(%arg0: i32) -> (i32, i32) {
    %c0_i32 = arith.constant 0 : i32
    %c0_i32_0 = arith.constant 0 : i32
    return %c0_i32, %arg0 : i32, i32
  }
  func.func @transform_1(%arg0: i32) -> (i32, i32) {
    %c0_i32 = arith.constant 0 : i32
    %c0_i32_0 = arith.constant 0 : i32
    %c0_i32_1 = arith.constant 0 : i32
    return %c0_i32, %c0_i32_0 : i32, i32
  }
}

</mosaic_0001>

<bundles_post_ra>
// kernel: tpu_custom_call.1
= control target key start
LH: loop header
LB: loop body
LE: loop exit
PB: predicated region body
PF: predicated region fallthrough
CT: control target
= control target key end

     0   :  { %6 = vsyncpa [#allocation4], 0  ;;  %s160_s0 = inlined_call_operand.hbm [shape: f32[8,8], index: 0, kind: input, shape index: {}]   ;;  %s161_s1 = inlined_call_operand.hbm [shape: f32[1,1], index: 1, kind: output, shape index: {}]  }
   0x1   :  { %7 = vsyncpa [#allocation5], 0  ;;  %s124_s6 = smov [#allocation3]   ;;  %s88_s10 = scalar_lea.hbm %s160_s0, 128 }
   0x2   :  { %s14_s7 = sshll.u32 %s124_s6, 4  ;;  %p89_p0 = scmp.ne.s32.totalorder %s160_s0, %s88_s10  ;;  %s15_s7 = int_to_ptr.vmem [resolvable:$true] %s14_s7 }
   0x3   :  { %p92_p1 = scmp.lt.u32.totalorder %s88_s10, %s160_s0 }
   0x5   :  { %p94_p2 = pnand %p92_p1, %p89_p0 }
   0x7   :  { %97 = shalt.err (!%p94_p2)
}
   0x8   :  { %s98_s15 = scalar_lea.vmem %s15_s7, 128  ;;  %p103_p4 = scmp.lt.s32.totalorder %s15_s7, %s15_s7 }
   0x9   :  { %p99_p3 = scmp.ne.s32.totalorder %s15_s7, %s98_s15  ;;  %p104_p5 = scmp.lt.s32.totalorder %s98_s15, %s98_s15 }
   0xb   :  { %p105_p6 = por %p104_p5, %p103_p4 }
   0xd   :  { %p106_p7 = pnand %p105_p6, %p99_p3 }
   0xf   :  { %109 = shalt.err (!%p106_p7)
}
  0x10   :  { %17 = dma.hbm_to_vmem [thread:$0]  %s160_s0, 128, %s15_s7, [#allocation4]  }
  0x11   :  { %120 = dma.done.wait [#allocation4], 128  }
  0x12   :  { %121 = vsyncadd [#allocation4], 4294967168  ;;  %v28_v0 = vlaneseq  ;;  %v27_v4 = vld [vmem:[#allocation3] sm:$0xff]  ;;  %vm47_vm3 = vcmask 64512   ;;  %s110_s21 = scalar_lea.hbm %s161_s1, 16 }
  0x13   :  { %p111_p8 = scmp.ne.s32.totalorder %s161_s1, %s110_s21  ;;  %p114_p9 = scmp.lt.u32.totalorder %s110_s21, %s161_s1 }
  0x14   :  { %v29_v1 = vshrl.u32 %v28_v0, 7  ;;  %v38_v3 = vand.u32 127, %v28_v0 }
  0x15   :  { %p116_p10 = pnand %p114_p9, %p111_p8 }
  0x16   :  { %v30_v2 = vsub.s32 0, %v29_v1  ;;  %vm41_vm0 = vcmp.gt.s32.totalorder %v29_v1, 0  ;;  %vm43_vm1 = vcmp.lt.s32.totalorder %v38_v3, 8 }
  0x17   :  { %vm44_vm2 = vmand %vm41_vm0, %vm43_vm1 }
  0x18   :  { %v31_v5 = vrot.slane %v27_v4, %v30_v2 }
  0x1a   :  { %v32_v6 = vsub.f32 %v27_v4, %v31_v5 }
  0x1c   :  { %v33_v7 = vadd.f32 0.5, %v32_v6 }
  0x1e   :  { %v34_v8 = vmax.f32 %v33_v7, 0.0 }
  0x20   :  { %v46_v9 = vsel %vm44_vm2, %v34_v8, 0.0 }
  0x21   :  { %v48_v10 = vsel %vm47_vm3, %v46_v9, 0.0 }
  0x22   :  { %49 = vadd.xlane.f32.xlu0 %v48_v10 }
  0xaf   :  { %v50_v11 = vpop.xlane.xlu0 %49 }
  0xb0   :  { %v51_v12 = vrot.slane %v50_v11, 4 }
  0xb2   :  { %v52_v13 = vadd.f32 %v51_v12, %v50_v11 }
  0xb4   :  { %v53_v14 = vrot.slane %v52_v13, 2 }
  0xb6   :  { %v54_v15 = vadd.f32 %v53_v14, %v52_v13 }
  0xb8   :  { %v55_v16 = vrot.slane %v54_v15, 1 }
  0xba   :  { %v56_v17 = vadd.f32 %v55_v16, %v54_v15 }
  0xbc   :  { %84 = vpush %v56_v17 }
  0xed   :  { %s85_s0 = spop %84 }
  0xee   :  { %s67_s18 = smul.f32 0.017857144, %s85_s0 }
  0xf0   :  { %69 = sst [smem:[#allocation6]] %s67_s18 }
  0xf1   :  { %119 = shalt.err (!%p116_p10)
}
  0xf2   :  { %s125_s26 = smov [#allocation6]  }
  0xf3   :  { %77 = dma.smem_to_hbm %s125_s26, 16, %s161_s1, [#allocation5]  }
  0xf4   :  { %122 = dma.done.wait [#allocation5], 16  }
  0xf5   :  { %123 = vsyncadd [#allocation5], 4294967280 }
  0xf6   :  { %81 = sfence }
  0xf7   :  { %82 = vsyncpa [#allocation4], 1 }
  0xf8   :  { %83 = vsyncpa [#allocation5], 1 }

</bundles_post_ra>
